<compile_context>
chip_gen: v5e
topology: v5e:2x2
jax: 0.10.0
libtpu: 0.0.40
codegen_flags: <defaults>
</compile_context>

<pallas_src>
import jax
import jax.numpy as jnp
from jax.experimental import pallas as pl
from jax.experimental.pallas import tpu as pltpu

_MiB = 1024 * 1024


# ---------------------------------------------------------------------------
# Hardware-aware defaults
# ---------------------------------------------------------------------------
def _device_kind():
    try:
        return jax.devices()[0].device_kind.lower()
    except Exception:
        return ""


def _is_v5e():
    k = _device_kind()
    return ("v5 lite" in k) or ("v5e" in k) or ("v5lite" in k)


def _has_bf16_valu():
    # v5e (and older generations) have no bf16 VALU: keep modulate math in f32.
    k = _device_kind()
    if not k:
        return True
    if _is_v5e():
        return False
    return not any(tag in k for tag in ("v2", "v3", "v4"))


def _default_vmem_limit_bytes():
    # ~40 MiB on v7x (64 MiB/TC physical), 48 MiB on v5e/v6e (128 MiB physical).
    try:
        cap = pltpu.get_tpu_info().vmem_capacity_bytes
    except Exception:
        cap = 128 * _MiB
    return int(min(48 * _MiB, (5 * cap) // 8))


# ---------------------------------------------------------------------------
# One-shot adaLN modulation kernel: [shift | 1 + scale] = Linear(SiLU(c)) (+1)
# (hoisted out of the per-token grid; runs once per forward pass)
# ---------------------------------------------------------------------------
def _adaln_kernel(c_ref, w_ref, b_ref, mod_ref):
    c = c_ref[...].astype(jnp.float32)
    c_silu = c * (1.0 / (1.0 + jnp.exp(-c)))                     # SiLU, f32
    mod = jnp.dot(c_silu.astype(w_ref.dtype), w_ref[...],
                  preferred_element_type=jnp.float32)            # one wide (B, 2D) dot
    mod = mod + b_ref[...].astype(jnp.float32)
    # Fold modulate's "+1" into the scale half (lanes >= D) once, so the main
    # kernel never pays a per-grid-step (1, D) VPU add.
    d = mod.shape[-1] // 2
    lane = jax.lax.broadcasted_iota(jnp.int32, mod.shape, 1)
    mod = mod + (lane >= d).astype(jnp.float32)
    mod_ref[...] = mod.astype(mod_ref.dtype)


def adaln_modulation(c, w_mod, b_mod, *, out_dtype=jnp.float32, vmem_limit_bytes=None):
    """Returns (B, 2D) = [shift | 1 + scale] in `out_dtype`.  w_mod/b_mod are
    passed whole: single wide MXU dot, no O(D^2) wrapper-side weight copies."""
    B, D = c.shape
    if vmem_limit_bytes is None:
        vmem_limit_bytes = _default_vmem_limit_bytes()
    return pl.pallas_call(
        _adaln_kernel,
        out_shape=jax.ShapeDtypeStruct((B, 2 * D), out_dtype),
        compiler_params=pltpu.CompilerParams(vmem_limit_bytes=vmem_limit_bytes),
    )(c, w_mod, b_mod)


# ---------------------------------------------------------------------------
# Main per-token kernel: LayerNorm -> modulate -> final Linear (lane-dense out)
# ---------------------------------------------------------------------------
def _final_layer_kernel(x_ref, shift_ref, scale_ref, w_t_ref, b_t_ref, o_ref):
    # LayerNorm statistics always in f32 (elementwise_affine=False, eps=1e-6).
    x = x_ref[...].astype(jnp.float32)                           # (bt, D)
    mean = jnp.mean(x, axis=-1, keepdims=True)
    xc = x - mean
    var = jnp.mean(xc * xc, axis=-1, keepdims=True)
    x_norm = xc * jax.lax.rsqrt(var + 1e-6)

    # modulate in the dtype the adaLN kernel emitted (f32, or bf16 on chips
    # with a bf16 VALU): x_norm * (1 + scale) + shift, "+1" already folded in.
    scale_p1 = scale_ref[...]                                    # (1, D)
    shift = shift_ref[...]                                       # (1, D)
    x_mod = x_norm.astype(scale_p1.dtype) * scale_p1 + shift     # (bt, D)

    # Final linear as an NT matmul so the result is already (P, bt): the store
    # is lane-dense (bt is a multiple of 128, or the full padded T).
    out_t = jax.lax.dot_general(
        w_t_ref[...], x_mod.astype(w_t_ref.dtype),
        dimension_numbers=(((1,), (1,)), ((), ())),
        preferred_element_type=jnp.float32)                      # (P, bt)
    out_t = out_t + b_t_ref[...].astype(jnp.float32)             # b_t is (P, 1)
    o_ref[...] = out_t.astype(o_ref.dtype)


def _choose_block_rows(T, D, P, x_bytes, o_bytes, mod_bytes, budget_bytes, cap=512):
    """Largest multiple of 128 (<= cap) whose pipelined footprint fits the VMEM
    budget.  Multiples of 128 keep the transposed output stores lane-dense and
    satisfy bf16 16-row sublane packing.  Never falls back to `T` for long
    sequences (worst case: 128)."""
    if T <= 128:
        return T                      # single full-extent block, no padding

    def footprint(bt):
        return (2 * bt * D * x_bytes          # double-buffered x tiles
                + 2 * P * bt * o_bytes        # double-buffered (P, bt) out tiles
                + 2 * 2 * D * mod_bytes       # shift / (1+scale) rows, double-buffered
                + P * D * x_bytes + P * 4     # resident W^T and bias (Buffered(1))
                + 4 * bt * D * 4              # f32 working set (x, centred, norm, mod)
                + 2 * _MiB)                   # Mosaic internal scratch margin

    hi = min(cap, ((T + 127) // 128) * 128)
    for bt in range(hi, 127, -128):
        if footprint(bt) <= budget_bytes:
            return bt
    return 128


def final_layer(x, c, w_mod, b_mod, w_lin, b_lin, *,
                block_rows=None, vmem_limit_bytes=None, mod_dtype=None):
    """x: (B, T, D); c: (B, D); w_mod: (D, 2D); b_mod: (1, 2D);
    w_lin: (D, P); b_lin: (1, P).  Returns (B, T, P) in x.dtype."""
    B, T, D = x.shape
    P = w_lin.shape[1]

    if vmem_limit_bytes is None:
        vmem_limit_bytes = _default_vmem_limit_bytes()
    if mod_dtype is None:
        mod_dtype = (x.dtype if (x.dtype == jnp.bfloat16 and _has_bf16_valu())
                     else jnp.float32)

    # ---- adaLN modulation hoisted out of the token grid (depends only on c) ----
    mod = adaln_modulation(c, w_mod, b_mod, out_dtype=mod_dtype,
                           vmem_limit_bytes=vmem_limit_bytes)
    # O(B*D) chunk of the small result (the O(D^2) weight slices are gone).
    shift, scale_p1 = mod[:, :D], mod[:, D:]

    # ---- tiling (multiples of 128 rows; pad T instead of oversizing a tile) ----
    if block_rows is None:
        xb = jnp.dtype(x.dtype).itemsize
        block_rows = _choose_block_rows(T, D, P, xb, xb,
                                        jnp.dtype(mod_dtype).itemsize,
                                        budget_bytes=vmem_limit_bytes)
    bt = int(min(block_rows, T))
    if bt < T and bt % 128 != 0:
        raise ValueError("block_rows must be a multiple of 128 unless it covers "
                         "the whole sequence (lane-dense transposed stores)")
    num_t = (T + bt - 1) // bt
    T_pad = num_t * bt
    if T_pad != T:
        x = jnp.pad(x, ((0, 0), (0, T_pad - T), (0, 0)))

    # Final-linear weights presented transposed so the kernel's NT matmul yields
    # a lane-dense (P, bt) tile directly (layout plumbing, not compute).
    w_t = jnp.swapaxes(w_lin, 0, 1)          # (P, D)
    b_t = jnp.swapaxes(b_lin, 0, 1)          # (P, 1)

    resident = dict(pipeline_mode=pl.Buffered(1))          # grid-invariant operands
    x_pipe = dict(pipeline_mode=pl.Buffered(3)) if _is_v5e() else {}

    out_t = pl.pallas_call(
        _final_layer_kernel,
        out_shape=jax.ShapeDtypeStruct((B, P, T_pad), x.dtype),
        grid_spec=pltpu.PrefetchScalarGridSpec(
            num_scalar_prefetch=0,
            # Larger token axis first -> better 2-TensorCore split on v7x.
            grid=(num_t, B),
            in_specs=[
                pl.BlockSpec((None, bt, D), lambda t, b: (b, t, 0), **x_pipe),  # x tile
                pl.BlockSpec((1, D), lambda t, b: (b, 0)),                      # shift row
                pl.BlockSpec((1, D), lambda t, b: (b, 0)),                      # 1+scale row
                pl.BlockSpec((P, D), lambda t, b: (0, 0), **resident),          # W_lin^T
                pl.BlockSpec((P, 1), lambda t, b: (0, 0), **resident),          # b_lin^T
            ],
            out_specs=pl.BlockSpec((None, P, bt), lambda t, b: (b, 0, t)),
        ),
        compiler_params=pltpu.CompilerParams(
            dimension_semantics=("parallel", "parallel"),
            vmem_limit_bytes=vmem_limit_bytes),
    )(x, shift, scale_p1, w_t, b_t)

    # Lane-dense kernel layout (B, P, T) -> module layout (B, T, P).
    return jnp.swapaxes(out_t[:, :, :T], 1, 2)


# ---------------------------------------------------------------------------
# Pure-JAX reference (mirrors the PyTorch FinalLayer.forward)
# ---------------------------------------------------------------------------
def reference(x, c, w_mod, b_mod, w_lin, b_lin, eps=1e-6):
    D = x.shape[-1]
    c_silu = c * jax.nn.sigmoid(c)
    mod = c_silu @ w_mod + b_mod
    shift, scale = mod[:, :D], mod[:, D:]
    mean = x.mean(-1, keepdims=True)
    var = jnp.square(x - mean).mean(-1, keepdims=True)
    x_norm = (x - mean) / jnp.sqrt(var + eps)
    x_mod = x_norm * (1.0 + scale[:, None, :]) + shift[:, None, :]
    return x_mod @ w_lin + b_lin


if __name__ == "__main__":
    def make_inputs(key, B, T, emb_dim, patch_size, out_channels, dtype):
        P = patch_size * out_channels
        kx, kc, k1, k2, k3, k4 = jax.random.split(key, 6)
        x = jax.random.normal(kx, (B, T, emb_dim), dtype=jnp.float32)
        c = jax.random.normal(kc, (B, emb_dim), dtype=jnp.float32)
        # PyTorch Linear weights are (out, in); stored transposed as (in, out).
        w_mod = jax.random.normal(k1, (emb_dim, 2 * emb_dim), jnp.float32) * 0.05
        b_mod = jax.random.normal(k2, (1, 2 * emb_dim), jnp.float32) * 0.05
        w_lin = jax.random.normal(k3, (emb_dim, P), jnp.float32) * 0.05
        b_lin = jax.random.normal(k4, (1, P), jnp.float32) * 0.05
        return tuple(a.astype(dtype) for a in (x, c, w_mod, b_mod, w_lin, b_lin))

    key = jax.random.PRNGKey(0)
    k1, k2 = jax.random.split(key)

    # --- test 1: tiny f32 (single full-T block path); must match tightly ---
    args32 = make_inputs(k1, B=2, T=16, emb_dim=32, patch_size=4, out_channels=2,
                         dtype=jnp.float32)
    out = jax.block_until_ready(final_layer(*args32))
    ref = reference(*args32)
    assert out.shape == (2, 16, 8), out.shape
    assert jnp.allclose(out, ref, atol=1e-5, rtol=1e-5), \
        float(jnp.max(jnp.abs(out - ref)))

    # --- test 2: bf16 at the HBM boundary, T=200 (padding + multi-block grid).
    # Stats/accumulation stay f32 inside the kernel; modulate runs in bf16 on
    # chips with a bf16 VALU, f32 on v5e. ---
    argsbf = make_inputs(k2, B=2, T=200, emb_dim=128, patch_size=4, out_channels=2,
                         dtype=jnp.bfloat16)
    ref_bf = reference(*(a.astype(jnp.float32) for a in argsbf))
    out_auto = jax.block_until_ready(final_layer(*argsbf))                  # auto block
    out_128 = jax.block_until_ready(final_layer(*argsbf, block_rows=128))   # 2 t-blocks
    assert out_auto.dtype == jnp.bfloat16 and out_auto.shape == (2, 200, 8)
    assert float(jnp.max(jnp.abs(out_auto.astype(jnp.float32) - ref_bf))) < 5e-2
    assert float(jnp.max(jnp.abs(out_128.astype(jnp.float32) - ref_bf))) < 5e-2

    print("KERNEL_OK")
</pallas_src>

<mosaic_0001>
module attributes {stable_mosaic.version = 11 : i64} {
  func.func @_adaln_kernel(%arg0: memref<2x32xf32, #tpu.memory_space<vmem>>, %arg1: memref<32x64xf32, #tpu.memory_space<vmem>>, %arg2: memref<1x64xf32, #tpu.memory_space<vmem>>, %arg3: memref<2x64xf32, #tpu.memory_space<vmem>>) attributes {dimension_semantics = [], scalar_prefetch = 0 : i64, scratch_operands = 0 : i64, tpu.core_type = #tpu.core_type<tc>} {
    %c0 = arith.constant 0 : index
    %c0_0 = arith.constant 0 : index
    %0 = vector.load %arg0[%c0, %c0_0] : memref<2x32xf32, #tpu.memory_space<vmem>>, vector<2x32xf32>
    %cst = arith.constant 0.000000e+00 : f32
    %1 = vector.broadcast %cst : f32 to vector<2x32xf32>
    %2 = arith.subf %1, %0 : vector<2x32xf32>
    %3 = math.exp %2 : vector<2x32xf32>
    %cst_1 = arith.constant 1.000000e+00 : f32
    %4 = vector.broadcast %cst_1 : f32 to vector<2x32xf32>
    %5 = arith.addf %4, %3 : vector<2x32xf32>
    %cst_2 = arith.constant 1.000000e+00 : f32
    %6 = vector.broadcast %cst_2 : f32 to vector<2x32xf32>
    %7 = arith.divf %6, %5 : vector<2x32xf32>
    %8 = arith.mulf %0, %7 : vector<2x32xf32>
    %c0_3 = arith.constant 0 : index
    %c0_4 = arith.constant 0 : index
    %9 = vector.load %arg1[%c0_3, %c0_4] : memref<32x64xf32, #tpu.memory_space<vmem>>, vector<32x64xf32>
    %cst_5 = arith.constant dense<0.000000e+00> : vector<2x64xf32>
    %10 = tpu.matmul %8, %9, %cst_5 {dimension_numbers = #tpu.dot_dimension_numbers<[1], [0], [0], [1], [0, 0, 1, 1], [], []>} : vector<2x32xf32>, vector<32x64xf32>, vector<2x64xf32> -> vector<2x64xf32>
    %c0_6 = arith.constant 0 : index
    %c0_7 = arith.constant 0 : index
    %11 = vector.load %arg2[%c0_6, %c0_7] : memref<1x64xf32, #tpu.memory_space<vmem>>, vector<1x64xf32>
    %12 = vector.broadcast %11 : vector<1x64xf32> to vector<2x64xf32>
    %13 = arith.addf %10, %12 : vector<2x64xf32>
    %14 = tpu.iota {dimensions = array<i32: 1>} : vector<2x64xi32>
    %c32_i32 = arith.constant 32 : i32
    %15 = vector.broadcast %c32_i32 : i32 to vector<2x64xi32>
    %16 = arith.cmpi sge, %14, %15 : vector<2x64xi32>
    %17 = arith.extui %16 : vector<2x64xi1> to vector<2x64xi32>
    %18 = arith.sitofp %17 : vector<2x64xi32> to vector<2x64xf32>
    %19 = arith.addf %13, %18 : vector<2x64xf32>
    %c0_8 = arith.constant 0 : index
    %c0_9 = arith.constant 0 : index
    %20 = vector.load %arg3[%c0_8, %c0_9] : memref<2x64xf32, #tpu.memory_space<vmem>>, vector<2x64xf32>
    tpu.vector_store %arg3[%c0_8, %c0_9], %19 {strides = array<i32>} : memref<2x64xf32, #tpu.memory_space<vmem>>, vector<2x64xf32>,
    return
  }
}

</mosaic_0001>

<bundles_post_ra>
// kernel: tpu_custom_call.1
= control target key start
LH: loop header
LB: loop body
LE: loop exit
PB: predicated region body
PF: predicated region fallthrough
CT: control target
= control target key end

     0   :  { %8 = vsyncpa [#allocation3], 0  ;;  %s253_s0 = inlined_call_operand.hbm [shape: f32[2,32], index: 0, kind: input, shape index: {}]   ;;  %s254_s1 = inlined_call_operand.hbm [shape: f32[32,64], index: 1, kind: input, shape index: {}]   ;;  %s255_s2 = inlined_call_operand.vmem [shape: f32[1,64], index: 2, kind: input, shape index: {}]   ;;  %s256_s3 = inlined_call_operand.hbm [shape: f32[2,64], index: 3, kind: output, shape index: {}]  }
   0x1   :  { %9 = vsyncpa [#allocation6], 0 }
   0x2   :  { %10 = vsyncpa [#allocation4], 0  ;;  %s16_s14 = sshll.u32 %s253_s0, 4  ;;  %s215_s15 = smov [#allocation2]   ;;  %s17_s14 = int_to_ptr.hbm [resolvable:$true] %s16_s14 }
   0x3   :  { %s18_s16 = sshll.u32 %s215_s15, 4  ;;  %s26_s19 = sshll.u32 %s254_s1, 4  ;;  %s19_s16 = int_to_ptr.vmem [resolvable:$true] %s18_s16  ;;  %s27_s19 = int_to_ptr.hbm [resolvable:$true] %s26_s19 }
   0x4   :  { %21 = dma.hbm_to_vmem [thread:$0]  %s17_s14, 32, %s19_s16, [#allocation3]  }
   0x5   :  { %s216_s20 = smov [#allocation5]   ;;  %s217_s22 = smov 128  }
   0x6   :  { %s28_s21 = sshll.u32 %s216_s20, 4  ;;  %s218_s23 = smov 8   ;;  %s29_s21 = int_to_ptr.vmem [resolvable:$true] %s28_s21 }
   0x7   :  { %34 = dma.hbm_to_vmem [thread:$0]  %s27_s19, 512, %s29_s21, [#allocation6], %s217_s22, %s217_s22, %s218_s23  }
   0x8   :  { %209 = dma.done.wait [#allocation3], 32  }
   0x9   :  { %210 = vsyncadd [#allocation3], 4294967264 }
   0xa   :  { %211 = dma.done.wait [#allocation6], 512  }
   0xb   :  { %212 = vsyncadd [#allocation6], 4294966784  ;;  %v69_v0 = vld [vmem:[#allocation5 + $0x18] sm:$0xff]  ;;  %v68_v1 = vld [vmem:[#allocation5 + $0x10] sm:$0xff]  ;;  %vm74_vm4 = vcmask 261120   ;;  %v98_v20 = vlaneseq  ;;  %v219_v24 = vmov 0.0  }
   0xc   :  { %90 = vmatpush.msra.mxu0 %v69_v0  ;;  %v45_v2 = vld [vmem:[#allocation2] sm:$0x3]  ;;  %v67_v3 = vld [vmem:[#allocation5 + $0x8] sm:$0xff]  ;;  %v66_v5 = vld [vmem:[#allocation5] sm:$0xff]  ;;  %s220_s24 = smov [#allocation7]   ;;  %s113_s28 = sshll.u32 %s256_s3, 4  ;;  %s114_s28 = int_to_ptr.hbm [resolvable:$true] %s113_s28 }
   0xd   :  { %v46_v4 = vsub.f32 0.0, %v45_v2  ;;  %v99_v21 = vand.u32 127, %v98_v20  ;;  %v132_v22 = vld [vmem:[%s255_s2] ss:$0 sm:$0xff]  ;;  %s111_s25 = sshll.u32 %s220_s24, 4  ;;  %vm104_vm6 = vcmask 517120   ;;  %s112_s25 = int_to_ptr.vmem [resolvable:$true] %s111_s25 }
   0xe   :  { %91 = vmatpush.msra.mxu0 %v68_v1 }
   0xf   :  { %v47_v6 = vmul.f32 1.442695, %v46_v4  ;;  %vm100_vm5 = vcmp.ge.s32.totalorder %v99_v21, 32 }
  0x10   :  { %92 = vmatpush.msra.mxu0 %v67_v3  ;;  %v125_v25 = vsel %vm100_vm5, 1.0, %v219_v24 }
  0x11   :  { %133 = vpow2.f32 %v47_v6 }
  0x12   :  { %93 = vmatpush.msra.mxu0 %v66_v5 }
  0x17   :  { %v134_v7 = vpop.eup %133 }
  0x18   :  { %v49_v8 = vadd.f32 1.0, %v134_v7 }
  0x1a   :  { %135 = vrcp.f32 %v49_v8  ;;  %v61_v11 = vand.u32 2147483648, %v49_v8  ;;  %vm55_vm0 = vweird.f32 %v49_v8  ;;  %v59_v13 = vand.u32 2147483647, %v49_v8 }
  0x1c   :  { %v62_v15 = vor.u32 1.1754944e-38, %v61_v11  ;;  %vm60_vm3 = vcmp.eq.f32.partialorder %v59_v13, 8.507059e+37 }
  0x20   :  { %v136_v9 = vpop.eup %135 }
  0x21   :  { %v51_v10 = vmul.f32 %v136_v9, %v49_v8  ;;  %vm56_vm1 = vweird.f32 %v136_v9 }
  0x22   :  { %vm57_vm2 = vmor %vm55_vm0, %vm56_vm1 }
  0x23   :  { %v52_v12 = vsub.f32 1.0, %v51_v10 }
  0x25   :  { %v53_v14 = vmul.f32 %v136_v9, %v52_v12 }
  0x27   :  { %v54_v16 = vadd.f32 %v136_v9, %v53_v14 }
  0x29   :  { %v58_v17 = vsel %vm57_vm2, %v136_v9, %v54_v16 }
  0x2a   :  { %v63_v18 = vsel %vm60_vm3, %v62_v15, %v58_v17 }
  0x2b   :  { %v65_v19 = vmul.f32 %v63_v18, %v45_v2 }
  0x2d   :  { %124 = vmatmul.msk.f32.vlgmr.msra.gmra.mxu0 %vm74_vm4, %v65_v19 }
  0xaa   :  { %v95_v23 = vpop.f32.mrf.mxu0 }
  0xab   :  { %v96_v26 = vadd.f32 %v132_v22, %v95_v23 }
  0xad   :  { %v103_v27 = vadd.f32 %v125_v25, %v96_v26 }
  0xaf   :  { %105 = vst.msk [vmem:[#allocation7] sm:$0x3] %vm104_vm6, %v103_v27 }
  0xb0   :  { %116 = dma.vmem_to_hbm [thread:$0]  %s112_s25, 32, %s114_s28, [#allocation4]  }
  0xb1   :  { %213 = dma.done.wait [#allocation4], 32  }
  0xb2   :  { %214 = vsyncadd [#allocation4], 4294967264 }
  0xb3   :  { %121 = vsyncpa [#allocation3], 1 }
  0xb4   :  { %122 = vsyncpa [#allocation6], 1 }
  0xb5   :  { %123 = vsyncpa [#allocation4], 1 }

</bundles_post_ra>
